<compile_context>
chip_gen: v6e
topology: v6e:2x2x1
jax: 0.10.0
libtpu: 0.0.40
codegen_flags: <defaults>
</compile_context>

<pallas_src>
import functools

import jax
import jax.numpy as jnp
from jax.experimental import pallas as pl
from jax.experimental.pallas import tpu as pltpu

LANE = 128      # vreg lane width
SUBLANE = 8     # vreg sublane count (f32)
MAX_TILE_B = 256


def _round_up(x, m):
    return (x + m - 1) // m * m


# --------------------------------------------------------------------------
# Parameter packing: one lane-dense (rows, W) f32 slab containing
#   w1 | b1 | w2 | b2 | w3 | b3
# with every block starting on an 8-row boundary so in-kernel static slices
# are tile-aligned views.
# --------------------------------------------------------------------------
def pack_params(params, input_size, hidden_size, num_classes):
    d_in_p = _round_up(input_size, SUBLANE)
    W = max(_round_up(hidden_size, LANE), _round_up(num_classes, LANE))

    def pad2(a, rows, cols):
        a = jnp.asarray(a, jnp.float32).reshape(a.shape[-2] if a.ndim == 2 else 1, -1)
        return jnp.zeros((rows, cols), jnp.float32).at[: a.shape[0], : a.shape[1]].set(a)

    w1 = pad2(params["w1"], d_in_p, W)        # (d_in_p, W)
    b1 = pad2(params["b1"], SUBLANE, W)       # bias lives in row 0
    w2 = pad2(params["w2"], W, W)
    b2 = pad2(params["b2"], SUBLANE, W)
    w3 = pad2(params["w3"], W, W)
    b3 = pad2(params["b3"], SUBLANE, W)

    packed = jnp.concatenate([w1, b1, w2, b2, w3, b3], axis=0)

    o_w1 = 0
    o_b1 = o_w1 + d_in_p
    o_w2 = o_b1 + SUBLANE
    o_b2 = o_w2 + W
    o_w3 = o_b2 + SUBLANE
    o_b3 = o_w3 + W
    meta = dict(d_in_p=d_in_p, W=W,
                o_w1=o_w1, o_b1=o_b1, o_w2=o_w2, o_b2=o_b2,
                o_w3=o_w3, o_b3=o_b3)
    return packed, meta


# --------------------------------------------------------------------------
# Kernel: fused 3-layer MLP, everything resident in VMEM for the current
# batch tile.  All slice offsets are static Python ints (8-row aligned).
# --------------------------------------------------------------------------
def _make_mlp_kernel(meta):
    d_in_p, W = meta["d_in_p"], meta["W"]
    o_w1, o_b1 = meta["o_w1"], meta["o_b1"]
    o_w2, o_b2 = meta["o_w2"], meta["o_b2"]
    o_w3, o_b3 = meta["o_w3"], meta["o_b3"]

    def kernel(x_ref, p_ref, out_ref):
        x = x_ref[...]                                     # (TB, d_in_p)

        # Layer 1: Linear + ReLU
        w1 = p_ref[o_w1:o_w1 + d_in_p, :]                  # (d_in_p, W)
        b1 = p_ref[o_b1:o_b1 + 1, :]                       # (1, W)
        h = jnp.dot(x, w1, preferred_element_type=jnp.float32) + b1
        h = jnp.maximum(h, 0.0)

        # Layer 2: Linear + ReLU
        w2 = p_ref[o_w2:o_w2 + W, :]
        b2 = p_ref[o_b2:o_b2 + 1, :]
        h = jnp.dot(h, w2, preferred_element_type=jnp.float32) + b2
        h = jnp.maximum(h, 0.0)

        # Layer 3: Linear (logits)
        w3 = p_ref[o_w3:o_w3 + W, :]
        b3 = p_ref[o_b3:o_b3 + 1, :]
        out = jnp.dot(h, w3, preferred_element_type=jnp.float32) + b3

        out_ref[...] = out.astype(out_ref.dtype)           # lane-dense (TB, W)

    return kernel


# --------------------------------------------------------------------------
# Wrapper
# --------------------------------------------------------------------------
@functools.partial(jax.jit, static_argnames=("num_classes", "meta_items"))
def _forward_impl(x, packed, *, num_classes, meta_items):
    meta = dict(meta_items)
    d_in_p, W = meta["d_in_p"], meta["W"]
    B, d_in = x.shape

    # Pad batch to sublane multiple; tile it if it grows large.
    B_p = _round_up(B, SUBLANE)
    if B_p > MAX_TILE_B:
        tile_b = MAX_TILE_B
        B_p = _round_up(B_p, tile_b)
    else:
        tile_b = B_p
    n_tiles = B_p // tile_b

    x_p = jnp.zeros((B_p, d_in_p), jnp.float32).at[:B, :d_in].set(x)

    flops = 2 * B_p * (d_in_p * W + W * W + W * W)
    bytes_accessed = 4 * (x_p.size + packed.size + B_p * W)

    out_p = pl.pallas_call(
        _make_mlp_kernel(meta),
        out_shape=jax.ShapeDtypeStruct((B_p, W), jnp.float32),
        grid_spec=pltpu.PrefetchScalarGridSpec(
            num_scalar_prefetch=0,
            grid=(n_tiles,),
            in_specs=[
                pl.BlockSpec((tile_b, d_in_p), lambda i: (i, 0)),
                pl.BlockSpec(packed.shape, lambda i: (0, 0)),   # params resident
            ],
            out_specs=pl.BlockSpec((tile_b, W), lambda i: (i, 0)),
        ),
        compiler_params=pltpu.CompilerParams(
            dimension_semantics=("parallel",),                  # 2 TCs on v7x
        ),
        cost_estimate=pl.CostEstimate(
            flops=flops, transcendentals=0, bytes_accessed=bytes_accessed),
    )(x_p, packed)

    return out_p[:B, :num_classes]


def neural_net_forward(x, packed, meta, num_classes):
    """x: (B, input_size) f32. packed/meta: from pack_params."""
    return _forward_impl(x, packed, num_classes=num_classes,
                         meta_items=tuple(sorted(meta.items())))


# --------------------------------------------------------------------------
# Init / reference
# --------------------------------------------------------------------------
def init_params(key, input_size, hidden_size, num_classes):
    """PyTorch nn.Linear(in, out) weight is (out, in); we store the transpose
    (in, out) so the kernel computes x @ W. Biases stored as (1, out)."""
    ks = jax.random.split(key, 6)

    def linear(kw, kb, fan_in, fan_out):
        bound = 1.0 / jnp.sqrt(fan_in)
        w = jax.random.uniform(kw, (fan_in, fan_out), jnp.float32, -bound, bound)
        b = jax.random.uniform(kb, (1, fan_out), jnp.float32, -bound, bound)
        return w, b

    w1, b1 = linear(ks[0], ks[1], input_size, hidden_size)
    w2, b2 = linear(ks[2], ks[3], hidden_size, hidden_size)
    w3, b3 = linear(ks[4], ks[5], hidden_size, num_classes)
    return {"w1": w1, "b1": b1, "w2": w2, "b2": b2, "w3": w3, "b3": b3}


def reference_forward(x, params):
    h1 = jnp.maximum(x @ params["w1"] + params["b1"], 0.0)
    h2 = jnp.maximum(h1 @ params["w2"] + params["b2"], 0.0)
    return h2 @ params["w3"] + params["b3"]


if __name__ == "__main__":
    batch = 8
    input_size = 64
    hidden_size = 32
    num_classes = 16

    key = jax.random.PRNGKey(0)
    k_x, k_p = jax.random.split(key)

    x = jax.random.normal(k_x, (batch, input_size), dtype=jnp.float32)
    params = init_params(k_p, input_size, hidden_size, num_classes)

    packed, meta = pack_params(params, input_size, hidden_size, num_classes)

    out = neural_net_forward(x, packed, meta, num_classes)
    out = jax.block_until_ready(out)

    ref = reference_forward(x, params)
    assert out.shape == (batch, num_classes)
    assert jnp.allclose(out, ref, atol=1e-5, rtol=1e-5)

    print("KERNEL_OK")
</pallas_src>

<mosaic_0001>
module attributes {stable_mosaic.version = 11 : i64} {
  func.func @kernel(%arg0: i32, %arg1: memref<8x64xf32, #tpu.memory_space<vmem>>, %arg2: memref<344x128xf32, #tpu.memory_space<vmem>>, %arg3: memref<8x128xf32, #tpu.memory_space<vmem>>) attributes {dimension_semantics = [#tpu.dimension_semantics<parallel>], iteration_bounds = array<i64: 1>, scalar_prefetch = 0 : i64, scratch_operands = 0 : i64, tpu.core_type = #tpu.core_type<tc>, window_params = [{transform_indices = @transform_0, window_bounds = array<i64: 8, 64>}, {pipeline_mode = #tpu.pipeline_mode<synchronous>, transform_indices = @transform_1, window_bounds = array<i64: 344, 128>}, {transform_indices = @transform_2, window_bounds = array<i64: 8, 128>}]} {
    %c0 = arith.constant 0 : index
    %c0_0 = arith.constant 0 : index
    %0 = vector.load %arg1[%c0, %c0_0] : memref<8x64xf32, #tpu.memory_space<vmem>>, vector<8x64xf32>
    %c0_1 = arith.constant 0 : index
    %c0_2 = arith.constant 0 : index
    %1 = vector.load %arg2[%c0_1, %c0_2] : memref<344x128xf32, #tpu.memory_space<vmem>>, vector<64x128xf32>
    %c64 = arith.constant 64 : index
    %c0_3 = arith.constant 0 : index
    %2 = vector.load %arg2[%c64, %c0_3] : memref<344x128xf32, #tpu.memory_space<vmem>>, vector<1x128xf32>
    %cst = arith.constant dense<0.000000e+00> : vector<8x128xf32>
    %3 = tpu.matmul %0, %1, %cst {dimension_numbers = #tpu.dot_dimension_numbers<[1], [0], [0], [1], [0, 0, 1, 1], [], []>} : vector<8x64xf32>, vector<64x128xf32>, vector<8x128xf32> -> vector<8x128xf32>
    %4 = vector.broadcast %2 : vector<1x128xf32> to vector<8x128xf32>
    %5 = arith.addf %3, %4 : vector<8x128xf32>
    %cst_4 = arith.constant 0.000000e+00 : f32
    %6 = vector.broadcast %cst_4 : f32 to vector<8x128xf32>
    %7 = arith.maximumf %5, %6 : vector<8x128xf32>
    %c72 = arith.constant 72 : index
    %c0_5 = arith.constant 0 : index
    %8 = vector.load %arg2[%c72, %c0_5] : memref<344x128xf32, #tpu.memory_space<vmem>>, vector<128x128xf32>
    %c200 = arith.constant 200 : index
    %c0_6 = arith.constant 0 : index
    %9 = vector.load %arg2[%c200, %c0_6] : memref<344x128xf32, #tpu.memory_space<vmem>>, vector<1x128xf32>
    %cst_7 = arith.constant dense<0.000000e+00> : vector<8x128xf32>
    %10 = tpu.matmul %7, %8, %cst_7 {dimension_numbers = #tpu.dot_dimension_numbers<[1], [0], [0], [1], [0, 0, 1, 1], [], []>} : vector<8x128xf32>, vector<128x128xf32>, vector<8x128xf32> -> vector<8x128xf32>
    %11 = vector.broadcast %9 : vector<1x128xf32> to vector<8x128xf32>
    %12 = arith.addf %10, %11 : vector<8x128xf32>
    %cst_8 = arith.constant 0.000000e+00 : f32
    %13 = vector.broadcast %cst_8 : f32 to vector<8x128xf32>
    %14 = arith.maximumf %12, %13 : vector<8x128xf32>
    %c208 = arith.constant 208 : index
    %c0_9 = arith.constant 0 : index
    %15 = vector.load %arg2[%c208, %c0_9] : memref<344x128xf32, #tpu.memory_space<vmem>>, vector<128x128xf32>
    %c336 = arith.constant 336 : index
    %c0_10 = arith.constant 0 : index
    %16 = vector.load %arg2[%c336, %c0_10] : memref<344x128xf32, #tpu.memory_space<vmem>>, vector<1x128xf32>
    %cst_11 = arith.constant dense<0.000000e+00> : vector<8x128xf32>
    %17 = tpu.matmul %14, %15, %cst_11 {dimension_numbers = #tpu.dot_dimension_numbers<[1], [0], [0], [1], [0, 0, 1, 1], [], []>} : vector<8x128xf32>, vector<128x128xf32>, vector<8x128xf32> -> vector<8x128xf32>
    %18 = vector.broadcast %16 : vector<1x128xf32> to vector<8x128xf32>
    %19 = arith.addf %17, %18 : vector<8x128xf32>
    %c0_12 = arith.constant 0 : index
    %c0_13 = arith.constant 0 : index
    %20 = vector.load %arg3[%c0_12, %c0_13] : memref<8x128xf32, #tpu.memory_space<vmem>>, vector<8x128xf32>
    tpu.vector_store %arg3[%c0_12, %c0_13], %19 {strides = array<i32>} : memref<8x128xf32, #tpu.memory_space<vmem>>, vector<8x128xf32>,
    return
  }
  func.func @transform_0(%arg0: i32) -> (i32, i32) {
    %c0_i32 = arith.constant 0 : i32
    %c0_i32_0 = arith.constant 0 : i32
    return %arg0, %c0_i32 : i32, i32
  }
  func.func @transform_1(%arg0: i32) -> (i32, i32) {
    %c0_i32 = arith.constant 0 : i32
    %c0_i32_0 = arith.constant 0 : i32
    %c0_i32_1 = arith.constant 0 : i32
    return %c0_i32, %c0_i32_0 : i32, i32
  }
  func.func @transform_2(%arg0: i32) -> (i32, i32) {
    %c0_i32 = arith.constant 0 : i32
    %c0_i32_0 = arith.constant 0 : i32
    return %arg0, %c0_i32 : i32, i32
  }
}

</mosaic_0001>

<bundles_post_ra>
// kernel: _forward_impl.1
= control target key start
LH: loop header
LB: loop body
LE: loop exit
PB: predicated region body
PF: predicated region fallthrough
CT: control target
= control target key end

     0   :  { %7 = vsyncpa [#allocation3], 0  ;;  %s613_s0 = inlined_call_operand.hbm [shape: f32[8,64], index: 0, kind: input, shape index: {}]   ;;  %s614_s1 = inlined_call_operand.hbm [shape: f32[344,128], index: 1, kind: input, shape index: {}]   ;;  %s615_s2 = inlined_call_operand.hbm [shape: f32[8,128], index: 2, kind: output, shape index: {}]  }
   0x1   :  { %8 = vsyncpa [#allocation6], 0 }
   0x2   :  { %9 = vsyncpa [#allocation4], 0  ;;  %s536_s9 = smov [#allocation2]   ;;  %s537_s11 = smov [#allocation5]  }
   0x3   :  { %s16_s10 = sshll.u32 %s536_s9, 4  ;;  %s25_s12 = sshll.u32 %s537_s11, 4  ;;  %s17_s10 = int_to_ptr.vmem [resolvable:$true] %s16_s10  ;;  %s26_s12 = int_to_ptr.vmem [resolvable:$true] %s25_s12 }
   0x4   :  { %s478_s13 = scalar_lea.vmem %s17_s10, 128  ;;  %p483_p1 = scmp.lt.s32.totalorder %s17_s10, %s17_s10 }
   0x5   :  { %p479_p0 = scmp.ne.s32.totalorder %s17_s10, %s478_s13  ;;  %p484_p2 = scmp.lt.s32.totalorder %s478_s13, %s478_s13 }
   0x7   :  { %p485_p3 = por %p484_p2, %p483_p1 }
   0x9   :  { %p486_p4 = pnand %p485_p3, %p479_p0 }
   0xb   :  { %489 = shalt.err (!%p486_p4)
}
   0xc   :  { %19 = dma.hbm_to_vmem [thread:$0]  %s613_s0, 128, %s17_s10, [#allocation3]  }
   0xd   :  { %s498_s16 = scalar_lea.vmem %s26_s12, 5504  ;;  %p503_p6 = scmp.lt.s32.totalorder %s26_s12, %s26_s12 }
   0xe   :  { %p499_p5 = scmp.ne.s32.totalorder %s26_s12, %s498_s16  ;;  %p504_p7 = scmp.lt.s32.totalorder %s498_s16, %s498_s16 }
  0x10   :  { %p505_p8 = por %p504_p7, %p503_p6 }
  0x12   :  { %p506_p9 = pnand %p505_p8, %p499_p5 }
  0x14   :  { %509 = shalt.err (!%p506_p9)
}
  0x15   :  { %s538_s17 = smov 128   ;;  %s539_s18 = smov 8  }
  0x16   :  { %31 = dma.hbm_to_vmem [thread:$0]  %s614_s1, 5504, %s26_s12, [#allocation6], %s538_s17, %s538_s17, %s539_s18  }
  0x17   :  { %530 = dma.done.wait [#allocation3], 128  }
  0x18   :  { %531 = vsyncadd [#allocation3], 4294967168 }
  0x19   :  { %532 = dma.done.wait [#allocation6], 5504  }
  0x1a   :  { %533 = vsyncadd [#allocation6], 4294961792  ;;  %v540_v0 = vmov 0.0   ;;  %vm541_vm0 = vmmov 0   ;;  %v46_v1 = vld [vmem:[#allocation5 + $0x38] sm:$0xff]  ;;  %v45_v2 = vld [vmem:[#allocation5 + $0x30] sm:$0xff] }
  0x1b   :  { %374 = vmatprep.subr.mxu0 %v540_v0  ;;  %390 = vmatprep.mubr.msk.f32.mxu0 %vm541_vm0, %v540_v0  ;;  %v44_v3 = vld [vmem:[#allocation5 + $0x28] sm:$0xff]  ;;  %v142_v4 = vld [vmem:[#allocation5 + $0xc0] sm:$0xff]  ;;  %v141_v5 = vld [vmem:[#allocation5 + $0xb8] sm:$0xff]  ;;  %vm52_vm1 = vcmask 523264   ;;  %s542_s0 = smov [#allocation7]  }
  0x1c   :  { %393 = vmatprep.subr.mxu1 %v540_v0  ;;  %425 = vmatprep.mubr.msk.f32.mxu1 %vm541_vm0, %v540_v0  ;;  %v43_v6 = vld [vmem:[#allocation5 + $0x20] sm:$0xff]  ;;  %v140_v7 = vld [vmem:[#allocation5 + $0xb0] sm:$0xff]  ;;  %v42_v8 = vld [vmem:[#allocation5 + $0x18] sm:$0xff]  ;;  %s317_s1 = sshll.u32 %s542_s0, 4  ;;  %s318_s1 = int_to_ptr.vmem [resolvable:$true] %s317_s1 }
  0x1d   :  { %375 = vmatpush3.msra.mxu0 %v46_v1  ;;  %394 = vmatpush3.msra.mxu1 %v142_v4  ;;  %v139_v9 = vld [vmem:[#allocation5 + $0xa8] sm:$0xff]  ;;  %v41_v10 = vld [vmem:[#allocation5 + $0x10] sm:$0xff]  ;;  %v138_v11 = vld [vmem:[#allocation5 + $0xa0] sm:$0xff]  ;;  %s510_s21 = scalar_lea.vmem %s318_s1, 128  ;;  %p515_p11 = scmp.lt.s32.totalorder %s318_s1, %s318_s1 }
  0x1e   :  { %376 = vmatprep.subr.mxu0 %v540_v0  ;;  %395 = vmatprep.subr.mxu1 %v540_v0  ;;  %v40_v12 = vld [vmem:[#allocation5 + $0x8] sm:$0xff]  ;;  %v137_v13 = vld [vmem:[#allocation5 + $0x98] sm:$0xff]  ;;  %v39_v14 = vld [vmem:[#allocation5] sm:$0xff]  ;;  %p511_p10 = scmp.ne.s32.totalorder %s318_s1, %s510_s21  ;;  %p516_p12 = scmp.lt.s32.totalorder %s510_s21, %s510_s21 }
  0x1f   :  { %377 = vmatpush3.msra.mxu0 %v45_v2  ;;  %396 = vmatpush3.msra.mxu1 %v141_v5  ;;  %v38_v15 = vld [vmem:[#allocation2] sm:$0xff]  ;;  %v136_v16 = vld [vmem:[#allocation5 + $0x90] sm:$0xff]  ;;  %v135_v17 = vld [vmem:[#allocation5 + $0x88] sm:$0xff] }
  0x20   :  { %378 = vmatprep.subr.mxu0 %v540_v0  ;;  %397 = vmatprep.subr.mxu1 %v540_v0  ;;  %v134_v18 = vld [vmem:[#allocation5 + $0x80] sm:$0xff]  ;;  %v133_v19 = vld [vmem:[#allocation5 + $0x78] sm:$0xff]  ;;  %v132_v20 = vld [vmem:[#allocation5 + $0x70] sm:$0xff]  ;;  %p517_p13 = por %p516_p12, %p515_p11 }
  0x21   :  { %379 = vmatpush3.msra.mxu0 %v44_v3  ;;  %398 = vmatpush3.msra.mxu1 %v140_v7  ;;  %v131_v21 = vld [vmem:[#allocation5 + $0x68] sm:$0xff]  ;;  %v130_v22 = vld [vmem:[#allocation5 + $0x60] sm:$0xff]  ;;  %v129_v23 = vld [vmem:[#allocation5 + $0x58] sm:$0xff] }
  0x22   :  { %380 = vmatprep.subr.mxu0 %v540_v0  ;;  %399 = vmatprep.subr.mxu1 %v540_v0  ;;  %v128_v24 = vld [vmem:[#allocation5 + $0x50] sm:$0xff]  ;;  %v127_v25 = vld [vmem:[#allocation5 + $0x48] sm:$0xff]  ;;  %v233_v27 = vld [vmem:[#allocation5 + $0x140] sm:$0xff]  ;;  %p518_p0 = pnand %p517_p13, %p511_p10 }
  0x23   :  { %381 = vmatpush3.msra.mxu0 %v43_v6  ;;  %400 = vmatpush3.msra.mxu1 %v139_v9  ;;  %v234_v26 = vld [vmem:[#allocation5 + $0x148] sm:$0xff]  ;;  %v232_v28 = vld [vmem:[#allocation5 + $0x138] sm:$0xff]  ;;  %v231_v29 = vld [vmem:[#allocation5 + $0x130] sm:$0xff] }
  0x24   :  { %382 = vmatprep.subr.mxu0 %v540_v0  ;;  %401 = vmatprep.subr.mxu1 %v540_v0  ;;  %v230_v30 = vld [vmem:[#allocation5 + $0x128] sm:$0xff]  ;;  %v229_v31 = vld [vmem:[#allocation5 + $0x120] sm:$0xff]  ;;  %v228_v32 = vld [vmem:[#allocation5 + $0x118] sm:$0xff] }
  0x25   :  { %383 = vmatpush3.msra.mxu0 %v42_v8  ;;  %402 = vmatpush3.msra.mxu1 %v138_v11  ;;  %v227_v33 = vld [vmem:[#allocation5 + $0x110] sm:$0xff]  ;;  %v226_v34 = vld [vmem:[#allocation5 + $0x108] sm:$0xff]  ;;  %v225_v35 = vld [vmem:[#allocation5 + $0x100] sm:$0xff] }
  0x26   :  { %384 = vmatprep.subr.mxu0 %v540_v0  ;;  %403 = vmatprep.subr.mxu1 %v540_v0  ;;  %v224_v36 = vld [vmem:[#allocation5 + $0xf8] sm:$0xff]  ;;  %v223_v37 = vld [vmem:[#allocation5 + $0xf0] sm:$0xff]  ;;  %v222_v38 = vld [vmem:[#allocation5 + $0xe8] sm:$0xff] }
  0x27   :  { %385 = vmatpush3.msra.mxu0 %v41_v10  ;;  %404 = vmatpush3.msra.mxu1 %v137_v13  ;;  %v327_v39 = vld [vmem:[#allocation5 + $0x40] ss:$0 sm:$0xff]  ;;  %v220_v45 = vld [vmem:[#allocation5 + $0xd8] sm:$0xff]  ;;  %v219_v46 = vld [vmem:[#allocation5 + $0xd0] sm:$0xff] }
  0x28   :  { %386 = vmatprep.subr.mxu0 %v540_v0  ;;  %405 = vmatprep.subr.mxu1 %v540_v0  ;;  %v221_v44 = vld [vmem:[#allocation5 + $0xe0] sm:$0xff]  ;;  %v329_v47 = vld [vmem:[#allocation5 + $0xc8] ss:$0 sm:$0xff]  ;;  %v330_v52 = vld [vmem:[#allocation5 + $0x150] ss:$0 sm:$0xff] }
  0x29   :  { %387 = vmatpush3.msra.mxu0 %v40_v12  ;;  %406 = vmatpush3.msra.mxu1 %v136_v16 }
  0x2a   :  { %388 = vmatprep.subr.mxu0 %v540_v0  ;;  %407 = vmatprep.subr.mxu1 %v540_v0 }
  0x2b   :  { %389 = vmatpush3.msra.mxu0 %v39_v14  ;;  %408 = vmatpush3.msra.mxu1 %v135_v17 }
  0x2c   :  { %391 = vmatmul.mubr.msk.f32.vlgmr.msra.gmra.mxu0 %vm52_vm1, %v38_v15  ;;  %428 = vmatprep.subr.mxu0 %v540_v0 }
  0x2d   :  { %460 = vmatprep.mubr.msk.f32.mxu0 %vm541_vm0, %v540_v0  ;;  %409 = vmatprep.subr.mxu1 %v540_v0 }
  0x2e   :  { %410 = vmatpush3.msra.mxu1 %v134_v18  ;;  %429 = vmatpush3.msra.mxu0 %v234_v26 }
  0x2f   :  { %411 = vmatprep.subr.mxu1 %v540_v0  ;;  %430 = vmatprep.subr.mxu0 %v540_v0 }
  0x30   :  { %412 = vmatpush3.msra.mxu1 %v133_v19  ;;  %431 = vmatpush3.msra.mxu0 %v233_v27 }
  0x31   :  { %413 = vmatprep.subr.mxu1 %v540_v0  ;;  %432 = vmatprep.subr.mxu0 %v540_v0 }
  0x32   :  { %414 = vmatpush3.msra.mxu1 %v132_v20  ;;  %433 = vmatpush3.msra.mxu0 %v232_v28 }
  0x33   :  { %415 = vmatprep.subr.mxu1 %v540_v0  ;;  %434 = vmatprep.subr.mxu0 %v540_v0 }
  0x34   :  { %416 = vmatpush3.msra.mxu1 %v131_v21  ;;  %435 = vmatpush3.msra.mxu0 %v231_v29 }
  0x35   :  { %417 = vmatprep.subr.mxu1 %v540_v0  ;;  %436 = vmatprep.subr.mxu0 %v540_v0 }
  0x36   :  { %418 = vmatpush3.msra.mxu1 %v130_v22  ;;  %437 = vmatpush3.msra.mxu0 %v230_v30 }
  0x37   :  { %419 = vmatprep.subr.mxu1 %v540_v0  ;;  %438 = vmatprep.subr.mxu0 %v540_v0 }
  0x38   :  { %420 = vmatpush3.msra.mxu1 %v129_v23  ;;  %439 = vmatpush3.msra.mxu0 %v229_v31 }
  0x39   :  { %421 = vmatprep.subr.mxu1 %v540_v0  ;;  %440 = vmatprep.subr.mxu0 %v540_v0 }
  0x3a   :  { %422 = vmatpush3.msra.mxu1 %v128_v24  ;;  %441 = vmatpush3.msra.mxu0 %v228_v32 }
  0x3b   :  { %423 = vmatprep.subr.mxu1 %v540_v0  ;;  %442 = vmatprep.subr.mxu0 %v540_v0 }
  0x3c   :  { %424 = vmatpush3.msra.mxu1 %v127_v25  ;;  %443 = vmatpush3.msra.mxu0 %v227_v33 }
  0x3d   :  { %444 = vmatprep.subr.mxu0 %v540_v0 }
  0x3e   :  { %445 = vmatpush3.msra.mxu0 %v226_v34 }
  0x3f   :  { %446 = vmatprep.subr.mxu0 %v540_v0 }
  0x40   :  { %447 = vmatpush3.msra.mxu0 %v225_v35 }
  0x41   :  { %448 = vmatprep.subr.mxu0 %v540_v0 }
  0x42   :  { %449 = vmatpush3.msra.mxu0 %v224_v36 }
  0x43   :  { %450 = vmatprep.subr.mxu0 %v540_v0 }
  0x44   :  { %451 = vmatpush3.msra.mxu0 %v223_v37 }
  0x45   :  { %452 = vmatprep.subr.mxu0 %v540_v0 }
  0x46   :  { %453 = vmatpush3.msra.mxu0 %v222_v38 }
  0x47   :  { %454 = vmatprep.subr.mxu0 %v540_v0 }
  0x48   :  { %455 = vmatpush3.msra.mxu0 %v221_v44 }
  0x49   :  { %456 = vmatprep.subr.mxu0 %v540_v0 }
  0x4a   :  { %457 = vmatpush3.msra.mxu0 %v220_v45 }
  0x4b   :  { %458 = vmatprep.subr.mxu0 %v540_v0 }
  0x4c   :  { %459 = vmatpush3.msra.mxu0 %v219_v46 }
  0xec   :  { %v122_v40 = vpop.f32.mrf.mxu0 }
  0xed   :  { %v123_v41 = vadd.f32 %v327_v39, %v122_v40 }
  0xee   :  { %v392_v42 = vpop.f32.mrf.mxu0 }
  0xef   :  { %v126_v43 = vmax.f32 %v123_v41, 0.0 }
  0xf1   :  { %426 = vmatmul.mubr.f32.vlgmr.msra.gmra.mxu1 %v126_v43 }
 0x1b1   :  { %v214_v48 = vpop.f32.mrf.mxu1 }
 0x1b2   :  { %v215_v49 = vadd.f32 %v329_v47, %v214_v48 }
 0x1b3   :  { %v427_v50 = vpop.f32.mrf.mxu1 }
 0x1b4   :  { %v218_v51 = vmax.f32 %v215_v49, 0.0 }
 0x1b6   :  { %461 = vmatmul.mubr.f32.vlgmr.msra.gmra.mxu0 %v218_v51 }
 0x276   :  { %v306_v53 = vpop.f32.mrf.mxu0 }
 0x277   :  { %v307_v54 = vadd.f32 %v330_v52, %v306_v53 }
 0x278   :  { %v462_v55 = vpop.f32.mrf.mxu0 }
 0x279   :  { %310 = vst [vmem:[#allocation7] sm:$0xff] %v307_v54 }
 0x27a   :  { %521 = shalt.err (!%p518_p0)
}
 0x27b   :  { %320 = dma.vmem_to_hbm [thread:$0]  %s318_s1, 128, %s615_s2, [#allocation4]  }
 0x27c   :  { %534 = dma.done.wait [#allocation4], 128  }
 0x27d   :  { %535 = vsyncadd [#allocation4], 4294967168 }
 0x27e   :  { %324 = vsyncpa [#allocation3], 1 }
 0x27f   :  { %325 = vsyncpa [#allocation6], 1 }
 0x280   :  { %326 = vsyncpa [#allocation4], 1 }

</bundles_post_ra>
